<compile_context>
chip_gen: v6e
topology: v6e:2x2x1
jax: 0.10.0
libtpu: 0.0.40
codegen_flags: <defaults>
</compile_context>

<pallas_src>
import functools

import jax
import jax.numpy as jnp
from jax.experimental import pallas as pl
from jax.experimental.pallas import tpu as pltpu


def _round_up(x, m):
    return ((x + m - 1) // m) * m


def _sbm_criterion_kernel(pred_ref, label_ref, loss_ref, counts_ref, cesum_ref,
                          *, v_total):
    pid = pl.program_id(0)

    @pl.when(pid == 0)
    def _init():
        counts_ref[...] = jnp.zeros_like(counts_ref)
        cesum_ref[...] = jnp.zeros_like(cesum_ref)

    pred = pred_ref[...].astype(jnp.float32)            # (tile_v, C) logits, f32 math
    labels = label_ref[...]                             # (tile_v, 1) int32 (-1 = padding)

    # One-hot mask built in-kernel (cheap VPU work hidden under the DMA).
    classes = jax.lax.broadcasted_iota(jnp.int32, pred.shape, 1)   # (tile_v, C)
    oh = (classes == labels).astype(jnp.float32)                   # zero rows for padding

    # Per-sample cross entropy: logsumexp(pred_i) - pred_i[label_i]
    m = jnp.max(pred, axis=-1, keepdims=True)                      # (tile_v, 1)
    lse = m + jnp.log(jnp.sum(jnp.exp(pred - m), axis=-1, keepdims=True))
    tgt = jnp.sum(pred * oh, axis=-1, keepdims=True)               # (tile_v, 1)
    ce = lse - tgt                                                 # (tile_v, 1)

    # Per-class accumulators (bincount + grouped CE sum as column reductions).
    counts_ref[...] += jnp.sum(oh, axis=0, keepdims=True)          # (1, C)
    cesum_ref[...] += jnp.sum(oh * ce, axis=0, keepdims=True)      # (1, C)

    @pl.when(pid == pl.num_programs(0) - 1)
    def _finalize():
        counts = counts_ref[...]
        ce_sum = cesum_ref[...]
        v = jnp.float32(v_total)
        weight = (v - counts) / v
        weight = weight * (counts > 0).astype(jnp.float32)
        num = jnp.sum(weight * ce_sum)
        den = jnp.sum(weight * counts)
        loss_ref[0, 0] = num / den


def sbm_criterion(pred, label, num_classes, tile_v=512):
    """pred: (V, C) float logits (any float dtype); label: (V,) int class ids.

    Returns the scalar weighted cross-entropy loss (float32).
    """
    V, C = pred.shape
    assert C == num_classes

    # Tile along V; second-to-last block dim must be a multiple of 8.
    tile_v = min(tile_v, _round_up(V, 8))
    v_pad = _round_up(V, tile_v)
    pad = v_pad - V
    if pad:
        pred = jnp.pad(pred, ((0, pad), (0, 0)))
        label = jnp.pad(label, (0, pad), constant_values=-1)
    label2d = label.astype(jnp.int32).reshape(v_pad, 1)
    grid = v_pad // tile_v

    kernel = functools.partial(_sbm_criterion_kernel, v_total=V)

    out = pl.pallas_call(
        kernel,
        out_shape=jax.ShapeDtypeStruct((1, 1), jnp.float32),
        grid_spec=pltpu.PrefetchScalarGridSpec(
            num_scalar_prefetch=0,
            grid=(grid,),
            in_specs=[
                pl.BlockSpec((tile_v, C), lambda i: (i, 0)),   # pred, native dtype
                pl.BlockSpec((tile_v, 1), lambda i: (i, 0)),   # labels (int32 column)
            ],
            out_specs=pl.BlockSpec(memory_space=pltpu.MemorySpace.SMEM),
            scratch_shapes=[
                pltpu.VMEM((1, C), jnp.float32),   # per-class counts
                pltpu.VMEM((1, C), jnp.float32),   # per-class CE sums
            ],
        ),
        compiler_params=pltpu.CompilerParams(
            dimension_semantics=("arbitrary",),    # reduction axis (accumulators)
        ),
    )(pred, label2d)
    return out[0, 0]


def _reference(pred, label, num_classes):
    """Pure-JAX reference mirroring the PyTorch module (for sanity check)."""
    V = label.shape[0]
    counts = jnp.sum(jax.nn.one_hot(label, num_classes, dtype=jnp.float32), axis=0)
    weight = (V - counts) / V * (counts > 0).astype(jnp.float32)
    logp = jax.nn.log_softmax(pred.astype(jnp.float32), axis=-1)
    ce = -jnp.take_along_axis(logp, label[:, None], axis=-1)[:, 0]
    w_i = weight[label]
    return jnp.sum(w_i * ce) / jnp.sum(w_i)


if __name__ == "__main__":
    key = jax.random.PRNGKey(0)

    # Test 1: small single-tile case.
    num_classes = 8
    V = 32
    k_pred, k_lab, k2_pred, k2_lab = jax.random.split(key, 4)
    pred = jax.random.normal(k_pred, (V, num_classes), dtype=jnp.float32)
    label = jax.random.randint(k_lab, (V,), 0, num_classes, dtype=jnp.int32)

    loss = sbm_criterion(pred, label, num_classes)
    loss = jax.block_until_ready(loss)
    ref = _reference(pred, label, num_classes)
    assert jnp.allclose(loss, ref, atol=1e-5, rtol=1e-5), (loss, ref)

    # Test 2: multi-tile grid with padding (V not a multiple of tile_v).
    num_classes2 = 6
    V2 = 200
    pred2 = jax.random.normal(k2_pred, (V2, num_classes2), dtype=jnp.float32)
    label2 = jax.random.randint(k2_lab, (V2,), 0, num_classes2, dtype=jnp.int32)

    loss2 = sbm_criterion(pred2, label2, num_classes2, tile_v=64)
    loss2 = jax.block_until_ready(loss2)
    ref2 = _reference(pred2, label2, num_classes2)
    assert jnp.allclose(loss2, ref2, atol=1e-5, rtol=1e-5), (loss2, ref2)

    print("KERNEL_OK")
</pallas_src>

<mosaic_0001>
module attributes {stable_mosaic.version = 11 : i64} {
  func.func @_sbm_criterion_kernel(%arg0: i32, %arg1: memref<32x8xf32, #tpu.memory_space<vmem>>, %arg2: memref<32x1xi32, #tpu.memory_space<vmem>>, %arg3: memref<1x1xf32, #tpu.memory_space<smem>>, %arg4: memref<1x8xf32, #tpu.memory_space<vmem>>, %arg5: memref<1x8xf32, #tpu.memory_space<vmem>>) attributes {dimension_semantics = [#tpu.dimension_semantics<arbitrary>], iteration_bounds = array<i64: 1>, scalar_prefetch = 0 : i64, scratch_operands = 2 : i64, tpu.core_type = #tpu.core_type<tc>, window_params = [{transform_indices = @transform_0, window_bounds = array<i64: 32, 8>}, {transform_indices = @transform_1, window_bounds = array<i64: 32, 1>}, {transform_indices = @transform_2, window_bounds = array<i64: 1, 1>}]} {
    %c0_i32 = arith.constant 0 : i32
    %0 = arith.cmpi eq, %arg0, %c0_i32 : i32
    %1 = arith.extui %0 : i1 to i32
    %c0_i32_0 = arith.constant 0 : i32
    %2 = arith.cmpi ne, %1, %c0_i32_0 : i32
    scf.if %2 {
      %cst_18 = arith.constant 0.000000e+00 : f32
      %38 = vector.broadcast %cst_18 : f32 to vector<1x8xf32>
      %c0_19 = arith.constant 0 : index
      %c0_20 = arith.constant 0 : index
      %39 = vector.load %arg4[%c0_19, %c0_20] : memref<1x8xf32, #tpu.memory_space<vmem>>, vector<1x8xf32>
      tpu.vector_store %arg4[%c0_19, %c0_20], %38 {strides = array<i32>} : memref<1x8xf32, #tpu.memory_space<vmem>>, vector<1x8xf32>,
      %cst_21 = arith.constant 0.000000e+00 : f32
      %40 = vector.broadcast %cst_21 : f32 to vector<1x8xf32>
      %c0_22 = arith.constant 0 : index
      %c0_23 = arith.constant 0 : index
      %41 = vector.load %arg5[%c0_22, %c0_23] : memref<1x8xf32, #tpu.memory_space<vmem>>, vector<1x8xf32>
      tpu.vector_store %arg5[%c0_22, %c0_23], %40 {strides = array<i32>} : memref<1x8xf32, #tpu.memory_space<vmem>>, vector<1x8xf32>,
    } else {
    }
    %c0 = arith.constant 0 : index
    %c0_1 = arith.constant 0 : index
    %3 = vector.load %arg1[%c0, %c0_1] : memref<32x8xf32, #tpu.memory_space<vmem>>, vector<32x8xf32>
    %c0_2 = arith.constant 0 : index
    %c0_3 = arith.constant 0 : index
    %4 = vector.load %arg2[%c0_2, %c0_3] : memref<32x1xi32, #tpu.memory_space<vmem>>, vector<32x1xi32>
    %5 = tpu.iota {dimensions = array<i32: 1>} : vector<32x8xi32>
    %6 = vector.broadcast %4 : vector<32x1xi32> to vector<32x8xi32>
    %7 = arith.cmpi eq, %5, %6 : vector<32x8xi32>
    %8 = arith.extui %7 : vector<32x8xi1> to vector<32x8xi32>
    %9 = arith.sitofp %8 : vector<32x8xi32> to vector<32x8xf32>
    %cst = arith.constant dense<0xFF800000> : vector<32xf32>
    %10 = vector.multi_reduction <maximumf>, %3, %cst [1] : vector<32x8xf32> to vector<32xf32>
    %11 = vector.shape_cast %10 : vector<32xf32> to vector<32x1xf32>
    %12 = vector.broadcast %11 : vector<32x1xf32> to vector<32x8xf32>
    %13 = arith.subf %3, %12 : vector<32x8xf32>
    %14 = math.exp %13 : vector<32x8xf32>
    %cst_4 = arith.constant dense<0.000000e+00> : vector<32xf32>
    %15 = vector.multi_reduction <add>, %14, %cst_4 [1] : vector<32x8xf32> to vector<32xf32>
    %16 = vector.shape_cast %15 : vector<32xf32> to vector<32x1xf32>
    %17 = math.log %16 : vector<32x1xf32>
    %18 = arith.addf %11, %17 : vector<32x1xf32>
    %19 = arith.mulf %3, %9 : vector<32x8xf32>
    %cst_5 = arith.constant dense<0.000000e+00> : vector<32xf32>
    %20 = vector.multi_reduction <add>, %19, %cst_5 [1] : vector<32x8xf32> to vector<32xf32>
    %21 = vector.shape_cast %20 : vector<32xf32> to vector<32x1xf32>
    %22 = arith.subf %18, %21 : vector<32x1xf32>
    %c0_6 = arith.constant 0 : index
    %c0_7 = arith.constant 0 : index
    %23 = vector.load %arg4[%c0_6, %c0_7] : memref<1x8xf32, #tpu.memory_space<vmem>>, vector<1x8xf32>
    %cst_8 = arith.constant dense<0.000000e+00> : vector<8xf32>
    %24 = vector.multi_reduction <add>, %9, %cst_8 [0] : vector<32x8xf32> to vector<8xf32>
    %25 = vector.shape_cast %24 : vector<8xf32> to vector<1x8xf32>
    %26 = arith.addf %23, %25 : vector<1x8xf32>
    %c0_9 = arith.constant 0 : index
    %c0_10 = arith.constant 0 : index
    %27 = vector.load %arg4[%c0_9, %c0_10] : memref<1x8xf32, #tpu.memory_space<vmem>>, vector<1x8xf32>
    tpu.vector_store %arg4[%c0_9, %c0_10], %26 {strides = array<i32>} : memref<1x8xf32, #tpu.memory_space<vmem>>, vector<1x8xf32>,
    %c0_11 = arith.constant 0 : index
    %c0_12 = arith.constant 0 : index
    %28 = vector.load %arg5[%c0_11, %c0_12] : memref<1x8xf32, #tpu.memory_space<vmem>>, vector<1x8xf32>
    %29 = vector.broadcast %22 : vector<32x1xf32> to vector<32x8xf32>
    %30 = arith.mulf %9, %29 : vector<32x8xf32>
    %cst_13 = arith.constant dense<0.000000e+00> : vector<8xf32>
    %31 = vector.multi_reduction <add>, %30, %cst_13 [0] : vector<32x8xf32> to vector<8xf32>
    %32 = vector.shape_cast %31 : vector<8xf32> to vector<1x8xf32>
    %33 = arith.addf %28, %32 : vector<1x8xf32>
    %c0_14 = arith.constant 0 : index
    %c0_15 = arith.constant 0 : index
    %34 = vector.load %arg5[%c0_14, %c0_15] : memref<1x8xf32, #tpu.memory_space<vmem>>, vector<1x8xf32>
    tpu.vector_store %arg5[%c0_14, %c0_15], %33 {strides = array<i32>} : memref<1x8xf32, #tpu.memory_space<vmem>>, vector<1x8xf32>,
    %c0_i32_16 = arith.constant 0 : i32
    %35 = arith.cmpi eq, %arg0, %c0_i32_16 : i32
    %36 = arith.extui %35 : i1 to i32
    %c0_i32_17 = arith.constant 0 : i32
    %37 = arith.cmpi ne, %36, %c0_i32_17 : i32
    scf.if %37 {
      %c0_18 = arith.constant 0 : index
      %c0_19 = arith.constant 0 : index
      %38 = vector.load %arg4[%c0_18, %c0_19] : memref<1x8xf32, #tpu.memory_space<vmem>>, vector<1x8xf32>
      %c0_20 = arith.constant 0 : index
      %c0_21 = arith.constant 0 : index
      %39 = vector.load %arg5[%c0_20, %c0_21] : memref<1x8xf32, #tpu.memory_space<vmem>>, vector<1x8xf32>
      %cst_22 = arith.constant 3.200000e+01 : f32
      %40 = vector.broadcast %cst_22 : f32 to vector<1x8xf32>
      %41 = arith.subf %40, %38 : vector<1x8xf32>
      %cst_23 = arith.constant 3.200000e+01 : f32
      %42 = vector.broadcast %cst_23 : f32 to vector<1x8xf32>
      %43 = arith.divf %41, %42 : vector<1x8xf32>
      %cst_24 = arith.constant 0.000000e+00 : f32
      %44 = vector.broadcast %cst_24 : f32 to vector<1x8xf32>
      %45 = arith.cmpf ogt, %38, %44 : vector<1x8xf32>
      %46 = arith.extui %45 : vector<1x8xi1> to vector<1x8xi32>
      %47 = arith.sitofp %46 : vector<1x8xi32> to vector<1x8xf32>
      %48 = arith.mulf %43, %47 : vector<1x8xf32>
      %49 = arith.mulf %48, %39 : vector<1x8xf32>
      %50 = vector.shape_cast %49 : vector<1x8xf32> to vector<1x1x8xf32>
      %cst_25 = arith.constant dense<0.000000e+00> : vector<1xf32>
      %51 = vector.multi_reduction <add>, %50, %cst_25 [1, 2] : vector<1x1x8xf32> to vector<1xf32>
      %52 = vector.shape_cast %51 : vector<1xf32> to vector<1x1x1xf32>
      %53 = vector.extract %52[0, 0, 0] : f32 from vector<1x1x1xf32>
      %54 = arith.mulf %48, %38 : vector<1x8xf32>
      %55 = vector.shape_cast %54 : vector<1x8xf32> to vector<1x1x8xf32>
      %cst_26 = arith.constant dense<0.000000e+00> : vector<1xf32>
      %56 = vector.multi_reduction <add>, %55, %cst_26 [1, 2] : vector<1x1x8xf32> to vector<1xf32>
      %57 = vector.shape_cast %56 : vector<1xf32> to vector<1x1x1xf32>
      %58 = vector.extract %57[0, 0, 0] : f32 from vector<1x1x1xf32>
      %59 = arith.divf %53, %58 : f32
      %c0_27 = arith.constant 0 : index
      %c0_28 = arith.constant 0 : index
      %60 = memref.load %arg3[%c0_27, %c0_28] : memref<1x1xf32, #tpu.memory_space<smem>>
      memref.store %59, %arg3[%c0_27, %c0_28] : memref<1x1xf32, #tpu.memory_space<smem>>
    } else {
    }
    return
  }
  func.func @transform_0(%arg0: i32) -> (i32, i32) {
    %c0_i32 = arith.constant 0 : i32
    %c0_i32_0 = arith.constant 0 : i32
    return %arg0, %c0_i32 : i32, i32
  }
  func.func @transform_1(%arg0: i32) -> (i32, i32) {
    %c0_i32 = arith.constant 0 : i32
    %c0_i32_0 = arith.constant 0 : i32
    return %arg0, %c0_i32 : i32, i32
  }
  func.func @transform_2(%arg0: i32) -> (i32, i32) {
    %c0_i32 = arith.constant 0 : i32
    %c0_i32_0 = arith.constant 0 : i32
    %c0_i32_1 = arith.constant 0 : i32
    return %c0_i32, %c0_i32_0 : i32, i32
  }
}

</mosaic_0001>

<bundles_post_ra>
// kernel: tpu_custom_call.1
= control target key start
LH: loop header
LB: loop body
LE: loop exit
PB: predicated region body
PF: predicated region fallthrough
CT: control target
= control target key end

     0   :  { %vm53_vm0 = vcmask 64512   ;;  %v256_v6 = vmov 0   ;;  %s390_s0 = inlined_call_operand.vmem [shape: f32[32,8], index: 0, kind: input, shape index: {}]   ;;  %s391_s1 = inlined_call_operand.vmem [shape: s32[32,1], index: 1, kind: input, shape index: {}]   ;;  %s392_s2 = inlined_call_operand.hbm [shape: f32[1,1], index: 2, kind: output, shape index: {}]  }
   0x1   :  { %v277_v0 = vld [vmem:[%s390_s0 + $0x10] sm:$0xff]  ;;  %v282_v1 = vld [vmem:[%s390_s0] sm:$0xff]  ;;  %v287_v2 = vld [vmem:[%s390_s0 + $0x18] sm:$0xff]  ;;  %227 = vset.pattern.permute.xlu1 %v256_v6  ;;  %226 = vset.pattern.permute.xlu0 %v256_v6 }
   0x2   :  { %v60_v3 = vsel %vm53_vm0, %v277_v0, -inf  ;;  %v54_v4 = vsel %vm53_vm0, %v282_v1, -inf  ;;  %v296_v5 = vld [vmem:[%s390_s0 + $0x8] sm:$0xff] }
   0x3   :  { %61 = vmax.xlane.f32.xlu1 %v60_v3  ;;  %55 = vmax.xlane.f32.xlu0 %v54_v4 }
   0x4   :  { %7 = vsyncpa [#allocation5], 0  ;;  %v63_v7 = vsel %vm53_vm0, %v287_v2, -inf  ;;  %v57_v8 = vsel %vm53_vm0, %v296_v5, -inf  ;;  %v24_v9 = vld [vmem:[%s391_s1 + $0x8] sm:$0xff]  ;;  %v25_v10 = vld [vmem:[%s391_s1 + $0x10] sm:$0xff]  ;;  %v27_v18 = vlaneseq }
   0x5   :  { %v23_v11 = vld [vmem:[%s391_s1] sm:$0xff]  ;;  %v26_v12 = vld [vmem:[%s391_s1 + $0x18] sm:$0xff]  ;;  %vm16_vm1 = vcmask 57344   ;;  %v257_v13 = vmov 0.0   ;;  %s258_s27 = smov [#allocation4]  }
   0x6   :  { %17 = vst.msk [vmem:[#allocation2] sm:$0x1] %vm16_vm1, %v257_v13  ;;  %18 = vst.msk [vmem:[#allocation3] sm:$0x1] %vm16_vm1, %v257_v13  ;;  %v28_v25 = vand.u32 127, %v27_v18 }
   0x7   :  { %64 = vmax.xlane.f32.xlu1 %v63_v7  ;;  %58 = vmax.xlane.f32.xlu0 %v57_v8 }
   0xd   :  { %v122_v61 = vld [vmem:[#allocation2] sm:$0x1] }
  0x18   :  { %33 = vperm.xlu1 %227, %v24_v9  }
  0x1c   :  { %36 = vperm.xlu1 %227, %v25_v10  }
  0x1d   :  { %30 = vperm.xlu0 %226, %v23_v11  }
  0x20   :  { %39 = vperm.xlu1 %227, %v26_v12  }
  0x8c   :  { %v318_v14 = vpop.xlane.xlu1 %61  ;;  %v320_v15 = vpop.xlane.xlu0 %55 }
  0x8d   :  { %v68_v16 = vsub.f32 %v277_v0, %v318_v14  ;;  %v66_v17 = vsub.f32 %v282_v1, %v320_v15 }
  0x8f   :  { %v74_v19 = vmul.f32 1.442695, %v68_v16  ;;  %v70_v20 = vmul.f32 1.442695, %v66_v17 }
  0x90   :  { %v326_v21 = vpop.xlane.xlu1 %64  ;;  %v328_v22 = vpop.xlane.xlu0 %58 }
  0x91   :  { %228 = vpow2.f32 %v74_v19  ;;  %v69_v23 = vsub.f32 %v287_v2, %v326_v21  ;;  %v67_v24 = vsub.f32 %v296_v5, %v328_v22 }
  0x92   :  { %230 = vpow2.f32 %v70_v20 }
  0x93   :  { %v76_v26 = vmul.f32 1.442695, %v69_v23  ;;  %v72_v27 = vmul.f32 1.442695, %v67_v24 }
  0x94   :  { %v34_v28 = vpop.permute.xlu1 %33 }
  0x95   :  { %232 = vpow2.f32 %v76_v26  ;;  %vm42_vm2 = vcmp.eq.s32.totalorder %v28_v25, %v34_v28 }
  0x96   :  { %234 = vpow2.f32 %v72_v27  ;;  %v335_v29 = vsel %vm42_vm2, 1.0, %v257_v13 }
  0x97   :  { %v124_v32 = vsel %vm53_vm0, %v335_v29, 0.0  ;;  %v103_v60 = vmul.f32 %v335_v29, %v296_v5 }
  0x98   :  { %v37_v30 = vpop.permute.xlu1 %36  ;;  %v31_v31 = vpop.permute.xlu0 %30 }
  0x99   :  { %vm43_vm3 = vcmp.eq.s32.totalorder %v28_v25, %v37_v30  ;;  %vm41_vm4 = vcmp.eq.s32.totalorder %v28_v25, %v31_v31  ;;  %v109_v63 = vsel %vm53_vm0, %v103_v60, 0.0 }
  0x9a   :  { %v340_v33 = vsel %vm43_vm3, 1.0, %v257_v13  ;;  %v343_v34 = vsel %vm41_vm4, 1.0, %v257_v13 }
  0x9b   :  { %v126_v35 = vsel %vm53_vm0, %v340_v33, 0.0  ;;  %v123_v36 = vsel %vm53_vm0, %v343_v34, 0.0  ;;  %v104_v49 = vmul.f32 %v340_v33, %v277_v0  ;;  %v102_v55 = vmul.f32 %v343_v34, %v282_v1 }
  0x9c   :  { %v125_v37 = vadd.f32 %v124_v32, %v123_v36  ;;  %v40_v38 = vpop.permute.xlu1 %39 }
  0x9d   :  { %vm44_vm5 = vcmp.eq.s32.totalorder %v28_v25, %v40_v38  ;;  %v112_v56 = vsel %vm53_vm0, %v104_v49, 0.0  ;;  %v106_v59 = vsel %vm53_vm0, %v102_v55, 0.0 }
  0x9e   :  { %v229_v39 = vpop.eup %228  ;;  %v350_v40 = vsel %vm44_vm5, 1.0, %v257_v13  ;;  %v127_v41 = vadd.f32 %v126_v35, %v125_v37 }
  0x9f   :  { %v231_v42 = vpop.eup %230  ;;  %v128_v43 = vsel %vm53_vm0, %v350_v40, 0.0  ;;  %v84_v48 = vsel %vm53_vm0, %v229_v39, 0.0  ;;  %v105_v1 = vmul.f32 %v350_v40, %v287_v2 }
  0xa0   :  { %v129_v44 = vadd.f32 %v128_v43, %v127_v41  ;;  %v78_v45 = vsel %vm53_vm0, %v231_v42, 0.0 }
  0xa1   :  { %79 = vadd.xlane.f32.xlu1 %v78_v45  ;;  %v115_v3 = vsel %vm53_vm0, %v105_v1, 0.0 }
  0xa2   :  { %v233_v46 = vpop.eup %232  ;;  %v130_v47 = vrot.slane %v129_v44, 4 }
  0xa3   :  { %v235_v50 = vpop.eup %234  ;;  %v87_v54 = vsel %vm53_vm0, %v233_v46, 0.0 }
  0xa4   :  { %v131_v51 = vadd.f32 %v130_v47, %v129_v44  ;;  %v81_v52 = vsel %vm53_vm0, %v235_v50, 0.0 }
  0xa5   :  { %85 = vadd.xlane.f32.xlu1 %v84_v48  ;;  %82 = vadd.xlane.f32.xlu0 %v81_v52 }
  0xa6   :  { %v132_v53 = vrot.slane %v131_v51, 2 }
  0xa8   :  { %v133_v57 = vadd.f32 %v132_v53, %v131_v51  ;;  %v139_v51 = vld [vmem:[#allocation3] sm:$0x1] }
  0xa9   :  { %88 = vadd.xlane.f32.xlu1 %v87_v54  ;;  %113 = vadd.xlane.f32.xlu0 %v112_v56 }
  0xaa   :  { %v134_v58 = vrot.slane %v133_v57, 1 }
  0xac   :  { %v135_v62 = vadd.f32 %v134_v58, %v133_v57 }
  0xad   :  { %107 = vadd.xlane.f32.xlu1 %v106_v59 }
  0xae   :  { %v136_v0 = vadd.f32 %v135_v62, %v122_v61 }
  0xb0   :  { %138 = vst.msk [vmem:[#allocation2] sm:$0x1] %vm16_vm1, %v136_v0 }
  0xb1   :  { %110 = vadd.xlane.f32.xlu1 %v109_v63 }
  0xb5   :  { %116 = vadd.xlane.f32.xlu1 %v115_v3 }
  0xb7   :  { %v162_v4 = vld [vmem:[#allocation2] sm:$0x1] }
  0xb8   :  { %v164_v6 = vsub.f32 32.0, %v162_v4  ;;  %vm167_vm6 = vcmp.gt.f32.partialorder %v162_v4, 0.0 }
  0xb9   :  { %v216_v5 = vsel %vm167_vm6, 1.0, %v257_v13 }
  0xba   :  { %v166_v7 = vmul.f32 0.03125, %v164_v6 }
  0xbc   :  { %v170_v8 = vmul.f32 %v216_v5, %v166_v7 }
  0xbe   :  { %v182_v9 = vmul.f32 %v170_v8, %v162_v4 }
  0xc0   :  { %v183_v10 = vsel %vm16_vm1, %v182_v9, 0.0 }
  0xc1   :  { %184 = vadd.xlane.f32.xlu1 %v183_v10 }
 0x12a   :  { %v80_v11 = vpop.xlane.xlu1 %79 }
 0x12b   :  { %236 = vlog2.f32 %v80_v11 }
 0x12e   :  { %v86_v2 = vpop.xlane.xlu1 %85  ;;  %v83_v12 = vpop.xlane.xlu0 %82 }
 0x12f   :  { %238 = vlog2.f32 %v86_v2 }
 0x130   :  { %240 = vlog2.f32 %v83_v12 }
 0x132   :  { %v89_v16 = vpop.xlane.xlu1 %88  ;;  %v114_v32 = vpop.xlane.xlu0 %113 }
 0x133   :  { %242 = vlog2.f32 %v89_v16 }
 0x136   :  { %v108_v18 = vpop.xlane.xlu1 %107 }
 0x138   :  { %v237_v17 = vpop.eup %236 }
 0x139   :  { %v91_v19 = vmul.f32 0.6931472, %v237_v17 }
 0x13a   :  { %v111_v27 = vpop.xlane.xlu1 %110 }
 0x13b   :  { %v98_v20 = vadd.f32 %v91_v19, %v320_v15 }
 0x13c   :  { %v239_v13 = vpop.eup %238 }
 0x13d   :  { %v241_v23 = vpop.eup %240  ;;  %v95_v24 = vmul.f32 0.6931472, %v239_v13  ;;  %v118_v26 = vsub.f32 %v98_v20, %v108_v18 }
 0x13e   :  { %v93_v25 = vmul.f32 0.6931472, %v241_v23  ;;  %v117_v42 = vpop.xlane.xlu1 %116 }
 0x13f   :  { %v100_v28 = vadd.f32 %v95_v24, %v318_v14  ;;  %v140_v37 = vmul.f32 %v343_v34, %v118_v26 }
 0x140   :  { %v243_v30 = vpop.eup %242  ;;  %v99_v31 = vadd.f32 %v93_v25, %v328_v22 }
 0x141   :  { %v97_v35 = vmul.f32 0.6931472, %v243_v30  ;;  %v120_v36 = vsub.f32 %v100_v28, %v114_v32  ;;  %v144_v44 = vsel %vm53_vm0, %v140_v37, 0.0 }
 0x142   :  { %v119_v38 = vsub.f32 %v99_v31, %v111_v27 }
 0x143   :  { %v101_v39 = vadd.f32 %v97_v35, %v326_v21  ;;  %v142_v41 = vmul.f32 %v340_v33, %v120_v36 }
 0x144   :  { %v141_v15 = vmul.f32 %v335_v29, %v119_v38 }
 0x145   :  { %v121_v43 = vsub.f32 %v101_v39, %v117_v42  ;;  %v147_v46 = vsel %vm53_vm0, %v142_v41, 0.0 }
 0x146   :  { %v145_v14 = vsel %vm53_vm0, %v141_v15, 0.0 }
 0x147   :  { %v146_v45 = vadd.f32 %v145_v14, %v144_v44  ;;  %v143_v22 = vmul.f32 %v350_v40, %v121_v43 }
 0x149   :  { %v148_v47 = vadd.f32 %v147_v46, %v146_v45  ;;  %v149_v34 = vsel %vm53_vm0, %v143_v22, 0.0 }
 0x14a   :  { %v185_v56 = vpop.xlane.xlu1 %184 }
 0x14b   :  { %v150_v48 = vadd.f32 %v149_v34, %v148_v47  ;;  %v186_v57 = vrot.slane %v185_v56, 4 }
 0x14d   :  { %v151_v21 = vrot.slane %v150_v48, 4  ;;  %v187_v58 = vadd.f32 %v186_v57, %v185_v56 }
 0x14f   :  { %v152_v49 = vadd.f32 %v151_v21, %v150_v48  ;;  %v188_v59 = vrot.slane %v187_v58, 2 }
 0x151   :  { %v153_v29 = vrot.slane %v152_v49, 2  ;;  %v189_v63 = vadd.f32 %v188_v59, %v187_v58 }
 0x153   :  { %v154_v50 = vadd.f32 %v153_v29, %v152_v49  ;;  %v190_v3 = vrot.slane %v189_v63, 1 }
 0x155   :  { %v155_v33 = vrot.slane %v154_v50, 1  ;;  %v191_v5 = vadd.f32 %v190_v3, %v189_v63 }
 0x157   :  { %v156_v52 = vadd.f32 %v155_v33, %v154_v50 }
 0x159   :  { %v157_v53 = vadd.f32 %v156_v52, %v139_v51 }
 0x15b   :  { %158 = vst.msk [vmem:[#allocation3] sm:$0x1] %vm16_vm1, %v157_v53 }
 0x162   :  { %v163_v54 = vld [vmem:[#allocation3] sm:$0x1] }
 0x163   :  { %v171_v55 = vmul.f32 %v170_v8, %v163_v54 }
 0x165   :  { %v172_v40 = vsel %vm16_vm1, %v171_v55, 0.0 }
 0x166   :  { %173 = vadd.xlane.f32.xlu0 %v172_v40 }
 0x1ef   :  { %v174_v60 = vpop.xlane.xlu0 %173 }
 0x1f0   :  { %v175_v61 = vrot.slane %v174_v60, 4 }
 0x1f2   :  { %v176_v62 = vadd.f32 %v175_v61, %v174_v60 }
 0x1f4   :  { %v177_v0 = vrot.slane %v176_v62, 2 }
 0x1f6   :  { %v178_v1 = vadd.f32 %v177_v0, %v176_v62 }
 0x1f8   :  { %v179_v4 = vrot.slane %v178_v1, 1 }
 0x1fa   :  { %v180_v6 = vadd.f32 %v179_v4, %v178_v1 }
 0x1fc   :  { %217 = vpush %v180_v6 }
 0x1fd   :  { %219 = vpush %v191_v5 }
 0x22d   :  { %s218_s1 = spop %217 }
 0x22e   :  { %s220_s24 = spop %219 }
 0x22f   :  { %v193_v7 = vstv %s220_s24 }
 0x230   :  { %244 = vrcp.f32 %v193_v7 }
 0x23d   :  { %v245_v8 = vpop.eup %244 }
 0x23e   :  { %221 = vpush %v245_v8 }
 0x26f   :  { %s222_s25 = spop %221 }
 0x270   :  { %s196_s26 = smul.f32 %s222_s25, %s218_s1 }
 0x272   :  { %198 = sst [smem:[#allocation4]] %s196_s26 }
 0x273   :  { %206 = dma.smem_to_hbm %s258_s27, 16, %s392_s2, [#allocation5]  }
 0x274   :  { %254 = dma.done.wait [#allocation5], 16  }
 0x275   :  { %255 = vsyncadd [#allocation5], 4294967280 }
 0x276   :  { %210 = sfence }
 0x277   :  { %211 = vsyncpa [#allocation5], 1 }

</bundles_post_ra>
